<compile_context>
chip_gen: v7x
topology: tpu7x:2x2x1
jax: 0.10.0
libtpu: 0.0.40
codegen_flags: <defaults>
</compile_context>

<pallas_src>
import functools

import jax
import jax.numpy as jnp
from jax.experimental import pallas as pl
from jax.experimental.pallas import tpu as pltpu

NUM_WAYPOINT = 30
INPUT_SIZE = NUM_WAYPOINT * 2 + 1   # 61
HIDDEN = 64
PACKED_IN = INPUT_SIZE + 4          # 65 = [x | eps]
_HP = jax.lax.Precision.HIGHEST


def _round_up(n, m):
    return ((n + m - 1) // m) * m


def _softplus(x):
    # numerically stable softplus (matches F.softplus semantics)
    return jnp.maximum(x, 0.0) + jnp.log1p(jnp.exp(-jnp.abs(x)))


# -----------------------------------------------------------------------------
# Kernel (feature-major / lane-dense)
# -----------------------------------------------------------------------------
def _independant_kernel(deterministic,
                        xe_ref,            # (tb, 65)  [x | eps], batch-major input
                        w_ext_ref,         # (68, 65)  [W_in^T | 0 ; eps-selector]
                        b_in_ref,          # (64, 1)
                        w_heads_ref,       # (8, 64)   fused heads, feature-major
                        b_heads_ref,       # (8, 1)
                        tails_ref,         # (8, 3)    autoregressive tail columns
                        out_ref):          # (12, tb)  [mu ; sigma ; action]
    xe = xe_ref[...]                                   # (tb, 65)

    # One A @ B^T MXU matmul: rows 0..63 = pre-ReLU hidden, rows 64..67 = eps^T.
    f = jax.lax.dot_general(w_ext_ref[...], xe,
                            (((1,), (1,)), ((), ())),
                            precision=_HP,
                            preferred_element_type=jnp.float32)   # (68, tb)
    s_t = jnp.maximum(f[0:HIDDEN, :] + b_in_ref[...], 0.0)        # (64, tb)
    eps_t = f[HIDDEN:HIDDEN + 4, :]                               # (4, tb)

    # Fused heads: (8,64) @ (64,tb) -> (8,tb).
    # Rows: [mu_a, mu_b, mu_c, mu_d, pre_sg_a, pre_sg_b, pre_sg_c, pre_sg_d]
    n_t = jnp.dot(w_heads_ref[...], s_t, precision=_HP,
                  preferred_element_type=jnp.float32) + b_heads_ref[...]
    tails_t = tails_ref[...]                                      # (8, 3)

    sigmas = []                       # cache softplus(pre_sigma) for heads a,b,c

    def t_row(k, n_cur):
        mu_k = n_cur[k:k + 1, :]                                  # (1, tb)
        sg_k = _softplus(n_cur[4 + k:5 + k, :])                   # final when read
        sigmas.append(sg_k)
        if deterministic:
            return mu_k
        return mu_k + sg_k * eps_t[k:k + 1, :]

    # Autoregressive corrections on the VPU (tail columns are zero for earlier
    # heads, so cumulative updates reproduce the sequential torch.cat exactly).
    n_t = n_t + tails_t[:, 0:1] * t_row(0, n_t)    # t_a feeds heads b, c, d
    n_t = n_t + tails_t[:, 1:2] * t_row(1, n_t)    # t_b feeds heads c, d
    n_t = n_t + tails_t[:, 2:3] * t_row(2, n_t)    # t_c feeds head d

    mu_t = n_t[0:4, :]                                            # (4, tb)
    sg_d = _softplus(n_t[7:8, :])                 # only head d needs a recompute
    sigma_t = jnp.concatenate(sigmas + [sg_d], axis=0)            # (4, tb)
    action_t = mu_t + sigma_t * eps_t                             # (4, tb)

    out_ref[...] = jnp.concatenate([mu_t, sigma_t, action_t], axis=0)   # (12, tb)


# -----------------------------------------------------------------------------
# Parameter / input packing (done once, outside the kernel)
# -----------------------------------------------------------------------------
def pack_inputs(x, eps):
    """Pack [x | eps] so eps rides in the padded lanes of the same DMA stream.

    Ideally the producer writes eps into columns 61..64 of the (B, 65) buffer
    directly; this helper is the fallback for separate arrays."""
    return jnp.concatenate([x.astype(jnp.float32), eps.astype(jnp.float32)], axis=1)


def pack_params(p):
    """Pack raw per-layer params into the fused, feature-major kernel layout."""
    H = HIDDEN
    w_a, w_b, w_c, w_d = p["w_a"], p["w_b"], p["w_c"], p["w_d"]
    b_a, b_b, b_c, b_d = p["b_a"], p["b_b"], p["b_c"], p["b_d"]

    # Fused heads acting on s: columns [mu_a..mu_d, sg_a..sg_d] -> transposed (8,64)
    w_mu = jnp.stack([w_a[:, 0], w_b[:H, 0], w_c[:H, 0], w_d[:H, 0]], axis=1)
    w_sg = jnp.stack([w_a[:, 1], w_b[:H, 1], w_c[:H, 1], w_d[:H, 1]], axis=1)
    w_heads_t = jnp.concatenate([w_mu, w_sg], axis=1).T.astype(jnp.float32)   # (8,64)

    b_heads_t = jnp.concatenate([
        jnp.stack([b_a[0, 0], b_b[0, 0], b_c[0, 0], b_d[0, 0]]),
        jnp.stack([b_a[0, 1], b_b[0, 1], b_c[0, 1], b_d[0, 1]]),
    ]).reshape(8, 1).astype(jnp.float32)                                      # (8,1)

    # (3, 8) tail rows: row k is multiplied by t_k and added to n.
    tails = jnp.zeros((3, 8), jnp.float32)
    # t_a -> heads b, c, d
    tails = tails.at[0, 1].set(w_b[H, 0]).at[0, 5].set(w_b[H, 1])
    tails = tails.at[0, 2].set(w_c[H, 0]).at[0, 6].set(w_c[H, 1])
    tails = tails.at[0, 3].set(w_d[H, 0]).at[0, 7].set(w_d[H, 1])
    # t_b -> heads c, d
    tails = tails.at[1, 2].set(w_c[H + 1, 0]).at[1, 6].set(w_c[H + 1, 1])
    tails = tails.at[1, 3].set(w_d[H + 1, 0]).at[1, 7].set(w_d[H + 1, 1])
    # t_c -> head d
    tails = tails.at[2, 3].set(w_d[H + 2, 0]).at[2, 7].set(w_d[H + 2, 1])
    tails_t = tails.T                                                         # (8,3)

    # Input projection, feature-major, zero-padded over the eps columns, with
    # identity rows appended so the same matmul also extracts eps^T.
    w_ext = jnp.zeros((H + 4, PACKED_IN), jnp.float32)
    w_ext = w_ext.at[:H, :INPUT_SIZE].set(p["w_in"].T.astype(jnp.float32))
    w_ext = w_ext.at[H:, INPUT_SIZE:].set(jnp.eye(4, dtype=jnp.float32))      # (68,65)
    b_in_t = p["b_in"].reshape(H, 1).astype(jnp.float32)                      # (64,1)

    return dict(w_ext=w_ext, b_in_t=b_in_t, w_heads_t=w_heads_t,
                b_heads_t=b_heads_t, tails_t=tails_t)


# -----------------------------------------------------------------------------
# Wrapper
# -----------------------------------------------------------------------------
def independant_forward(xe, packed, deterministic=False, batch_tile=2048):
    """xe: (B, 65) packed [x | eps].  Returns (mu, sigma, action), each (B, 4) f32."""
    B, F2 = xe.shape
    assert F2 == PACKED_IN, f"expected packed input with {PACKED_IN} columns"

    flat = (xe, packed["w_ext"], packed["b_in_t"], packed["w_heads_t"],
            packed["b_heads_t"], packed["tails_t"])
    kernel = functools.partial(_independant_kernel, bool(deterministic))
    out_shape = jax.ShapeDtypeStruct((12, B), jnp.float32)

    # Clamp: multiple of 128 (lane-dense out block), <= 4096 (v5e scoped-VMEM safe).
    batch_tile = min(max(128, (int(batch_tile) // 128) * 128), 4096)

    if B <= batch_tile:
        # Small-batch latency path: no grid, whole arrays resident in VMEM.
        vmem = pl.BlockSpec(memory_space=pltpu.MemorySpace.VMEM)
        out = pl.pallas_call(
            kernel, out_shape=out_shape,
            in_specs=[vmem] * len(flat), out_specs=vmem,
        )(*flat)
    else:
        # Large-batch path: batch-tiled cdiv grid (ragged last block is masked),
        # weights VMEM-resident via constant index maps, >=2 steps for v7x megacore.
        tb = min(batch_tile, _round_up(pl.cdiv(B, 2), 128))
        grid = (pl.cdiv(B, tb),)

        def _const_spec(a):
            return pl.BlockSpec(a.shape, lambda i, _n=a.ndim: (0,) * _n)

        out = pl.pallas_call(
            kernel, out_shape=out_shape, grid=grid,
            in_specs=[pl.BlockSpec((tb, F2), lambda i: (i, 0))]
                     + [_const_spec(a) for a in flat[1:]],
            out_specs=pl.BlockSpec((12, tb), lambda i: (0, i)),
            compiler_params=pltpu.CompilerParams(
                dimension_semantics=("parallel",)),
        )(*flat)

    o = out.T                                   # (B, 12)
    return o[:, 0:4], o[:, 4:8], o[:, 8:12]


# -----------------------------------------------------------------------------
# Raw parameter init (mimics nn.Linear uniform(-1/sqrt(fan_in), +1/sqrt(fan_in)))
# -----------------------------------------------------------------------------
def init_params(key):
    def linear(k, fan_in, fan_out):
        kw, kb = jax.random.split(k)
        bound = 1.0 / jnp.sqrt(float(fan_in))
        w = jax.random.uniform(kw, (fan_in, fan_out), jnp.float32, -bound, bound)
        b = jax.random.uniform(kb, (1, fan_out), jnp.float32, -bound, bound)
        return w, b

    k_in, k_a, k_b, k_c, k_d = jax.random.split(key, 5)
    w_in, b_in = linear(k_in, INPUT_SIZE, HIDDEN)
    w_a, b_a = linear(k_a, HIDDEN, 2)
    w_b, b_b = linear(k_b, 1 + HIDDEN, 2)
    w_c, b_c = linear(k_c, 1 + 1 + HIDDEN, 2)
    w_d, b_d = linear(k_d, 1 + 1 + 1 + HIDDEN, 2)
    return dict(w_in=w_in, b_in=b_in, w_a=w_a, b_a=b_a, w_b=w_b, b_b=b_b,
                w_c=w_c, b_c=b_c, w_d=w_d, b_d=b_d)


# -----------------------------------------------------------------------------
# Pure-JAX reference mirroring the PyTorch forward (with pre-sampled eps)
# -----------------------------------------------------------------------------
def _reference_forward(x, eps, p, deterministic):
    s = jnp.maximum(jnp.dot(x, p["w_in"], precision=_HP) + p["b_in"], 0.0)

    def head(s_cat, w, b, e):
        n = jnp.dot(s_cat, w, precision=_HP) + b
        mu = n[:, 0:1]
        sg = jax.nn.softplus(n[:, 1:2])
        return mu, sg, mu + sg * e

    mu_a, sg_a, a_a = head(s, p["w_a"], p["b_a"], eps[:, 0:1])
    s = jnp.concatenate([s, mu_a if deterministic else a_a], axis=1)
    mu_b, sg_b, a_b = head(s, p["w_b"], p["b_b"], eps[:, 1:2])
    s = jnp.concatenate([s, mu_b if deterministic else a_b], axis=1)
    mu_c, sg_c, a_c = head(s, p["w_c"], p["b_c"], eps[:, 2:3])
    s = jnp.concatenate([s, mu_c if deterministic else a_c], axis=1)
    mu_d, sg_d, a_d = head(s, p["w_d"], p["b_d"], eps[:, 3:4])
    mu = jnp.concatenate([mu_a, mu_b, mu_c, mu_d], axis=1)
    sg = jnp.concatenate([sg_a, sg_b, sg_c, sg_d], axis=1)
    ac = jnp.concatenate([a_a, a_b, a_c, a_d], axis=1)
    return mu, sg, ac


def _check(got, want, name):
    for g, w, tag in zip(got, want, ("mu", "sigma", "action")):
        assert jnp.allclose(g, w, atol=1e-4, rtol=1e-4), f"{tag} mismatch ({name})"


if __name__ == "__main__":
    key = jax.random.PRNGKey(0)
    k_p, k_x, k_e, k_x2, k_e2 = jax.random.split(key, 5)

    params = init_params(k_p)
    packed = pack_params(params)

    # ---- small batch (no-grid path), stochastic + deterministic ----
    B = 4
    x = jax.random.normal(k_x, (B, INPUT_SIZE), jnp.float32)
    eps = jax.random.normal(k_e, (B, 4), jnp.float32)   # pre-sampled torch.randn noise
    xe = pack_inputs(x, eps)

    out = independant_forward(xe, packed, deterministic=False)
    jax.block_until_ready(out)
    _check(out, _reference_forward(x, eps, params, False), "small/stochastic")

    out_d = independant_forward(xe, packed, deterministic=True)
    jax.block_until_ready(out_d)
    _check(out_d, _reference_forward(x, eps, params, True), "small/deterministic")

    # ---- grid path with a ragged last block (cdiv grid, "parallel" batch axis) ----
    B2 = 520
    x2 = jax.random.normal(k_x2, (B2, INPUT_SIZE), jnp.float32)
    eps2 = jax.random.normal(k_e2, (B2, 4), jnp.float32)
    xe2 = pack_inputs(x2, eps2)

    out2 = independant_forward(xe2, packed, deterministic=False, batch_tile=256)
    jax.block_until_ready(out2)
    _check(out2, _reference_forward(x2, eps2, params, False), "tiled/ragged")

    print("KERNEL_OK")
</pallas_src>

<mosaic_0001>
module attributes {stable_mosaic.version = 11 : i64} {
  func.func @_independant_kernel(%arg0: memref<4x65xf32, #tpu.memory_space<vmem>>, %arg1: memref<68x65xf32, #tpu.memory_space<vmem>>, %arg2: memref<64x1xf32, #tpu.memory_space<vmem>>, %arg3: memref<8x64xf32, #tpu.memory_space<vmem>>, %arg4: memref<8x1xf32, #tpu.memory_space<vmem>>, %arg5: memref<8x3xf32, #tpu.memory_space<vmem>>, %arg6: memref<12x4xf32, #tpu.memory_space<vmem>>) attributes {dimension_semantics = [], scalar_prefetch = 0 : i64, scratch_operands = 0 : i64, tpu.core_type = #tpu.core_type<tc>} {
    %c0 = arith.constant 0 : index
    %c0_0 = arith.constant 0 : index
    %0 = vector.load %arg0[%c0, %c0_0] : memref<4x65xf32, #tpu.memory_space<vmem>>, vector<4x65xf32>
    %c0_1 = arith.constant 0 : index
    %c0_2 = arith.constant 0 : index
    %1 = vector.load %arg1[%c0_1, %c0_2] : memref<68x65xf32, #tpu.memory_space<vmem>>, vector<68x65xf32>
    %cst = arith.constant dense<0.000000e+00> : vector<68x4xf32>
    %2 = tpu.matmul %1, %0, %cst {dimension_numbers = #tpu.dot_dimension_numbers<[1], [1], [0], [0], [0, 0, 1, 0], [], []>, precision = #tpu.contract_precision<fp32>} : vector<68x65xf32>, vector<4x65xf32>, vector<68x4xf32> -> vector<68x4xf32>
    %3 = vector.extract_strided_slice %2 {offsets = [0, 0], sizes = [64, 4], strides = [1, 1]} : vector<68x4xf32> to vector<64x4xf32>
    %c0_3 = arith.constant 0 : index
    %c0_4 = arith.constant 0 : index
    %4 = vector.load %arg2[%c0_3, %c0_4] : memref<64x1xf32, #tpu.memory_space<vmem>>, vector<64x1xf32>
    %5 = vector.broadcast %4 : vector<64x1xf32> to vector<64x4xf32>
    %6 = arith.addf %3, %5 : vector<64x4xf32>
    %cst_5 = arith.constant 0.000000e+00 : f32
    %7 = vector.broadcast %cst_5 : f32 to vector<64x4xf32>
    %8 = arith.maximumf %6, %7 : vector<64x4xf32>
    %9 = vector.extract_strided_slice %2 {offsets = [64, 0], sizes = [4, 4], strides = [1, 1]} : vector<68x4xf32> to vector<4x4xf32>
    %c0_6 = arith.constant 0 : index
    %c0_7 = arith.constant 0 : index
    %10 = vector.load %arg3[%c0_6, %c0_7] : memref<8x64xf32, #tpu.memory_space<vmem>>, vector<8x64xf32>
    %cst_8 = arith.constant dense<0.000000e+00> : vector<8x4xf32>
    %11 = tpu.matmul %10, %8, %cst_8 {dimension_numbers = #tpu.dot_dimension_numbers<[1], [0], [0], [1], [0, 0, 1, 1], [], []>, precision = #tpu.contract_precision<fp32>} : vector<8x64xf32>, vector<64x4xf32>, vector<8x4xf32> -> vector<8x4xf32>
    %c0_9 = arith.constant 0 : index
    %c0_10 = arith.constant 0 : index
    %12 = vector.load %arg4[%c0_9, %c0_10] : memref<8x1xf32, #tpu.memory_space<vmem>>, vector<8x1xf32>
    %13 = vector.broadcast %12 : vector<8x1xf32> to vector<8x4xf32>
    %14 = arith.addf %11, %13 : vector<8x4xf32>
    %c0_11 = arith.constant 0 : index
    %c0_12 = arith.constant 0 : index
    %15 = vector.load %arg5[%c0_11, %c0_12] : memref<8x3xf32, #tpu.memory_space<vmem>>, vector<8x3xf32>
    %16 = vector.extract_strided_slice %15 {offsets = [0, 0], sizes = [8, 1], strides = [1, 1]} : vector<8x3xf32> to vector<8x1xf32>
    %17 = vector.extract_strided_slice %14 {offsets = [0, 0], sizes = [1, 4], strides = [1, 1]} : vector<8x4xf32> to vector<1x4xf32>
    %18 = vector.extract_strided_slice %14 {offsets = [4, 0], sizes = [1, 4], strides = [1, 1]} : vector<8x4xf32> to vector<1x4xf32>
    %cst_13 = arith.constant 0.000000e+00 : f32
    %19 = vector.broadcast %cst_13 : f32 to vector<1x4xf32>
    %20 = arith.maximumf %18, %19 : vector<1x4xf32>
    %21 = math.absf %18 : vector<1x4xf32>
    %cst_14 = arith.constant 0.000000e+00 : f32
    %22 = vector.broadcast %cst_14 : f32 to vector<1x4xf32>
    %23 = arith.subf %22, %21 : vector<1x4xf32>
    %24 = math.exp %23 : vector<1x4xf32>
    %25 = math.log1p %24 : vector<1x4xf32>
    %26 = arith.addf %20, %25 : vector<1x4xf32>
    %27 = vector.extract_strided_slice %9 {offsets = [0, 0], sizes = [1, 4], strides = [1, 1]} : vector<4x4xf32> to vector<1x4xf32>
    %28 = arith.mulf %26, %27 : vector<1x4xf32>
    %29 = arith.addf %17, %28 : vector<1x4xf32>
    %30 = vector.broadcast %16 : vector<8x1xf32> to vector<8x4xf32>
    %31 = vector.broadcast %29 : vector<1x4xf32> to vector<8x4xf32>
    %32 = arith.mulf %30, %31 : vector<8x4xf32>
    %33 = arith.addf %14, %32 : vector<8x4xf32>
    %34 = vector.extract_strided_slice %15 {offsets = [0, 1], sizes = [8, 1], strides = [1, 1]} : vector<8x3xf32> to vector<8x1xf32>
    %35 = vector.extract_strided_slice %33 {offsets = [1, 0], sizes = [1, 4], strides = [1, 1]} : vector<8x4xf32> to vector<1x4xf32>
    %36 = vector.extract_strided_slice %33 {offsets = [5, 0], sizes = [1, 4], strides = [1, 1]} : vector<8x4xf32> to vector<1x4xf32>
    %cst_15 = arith.constant 0.000000e+00 : f32
    %37 = vector.broadcast %cst_15 : f32 to vector<1x4xf32>
    %38 = arith.maximumf %36, %37 : vector<1x4xf32>
    %39 = math.absf %36 : vector<1x4xf32>
    %cst_16 = arith.constant 0.000000e+00 : f32
    %40 = vector.broadcast %cst_16 : f32 to vector<1x4xf32>
    %41 = arith.subf %40, %39 : vector<1x4xf32>
    %42 = math.exp %41 : vector<1x4xf32>
    %43 = math.log1p %42 : vector<1x4xf32>
    %44 = arith.addf %38, %43 : vector<1x4xf32>
    %45 = vector.extract_strided_slice %9 {offsets = [1, 0], sizes = [1, 4], strides = [1, 1]} : vector<4x4xf32> to vector<1x4xf32>
    %46 = arith.mulf %44, %45 : vector<1x4xf32>
    %47 = arith.addf %35, %46 : vector<1x4xf32>
    %48 = vector.broadcast %34 : vector<8x1xf32> to vector<8x4xf32>
    %49 = vector.broadcast %47 : vector<1x4xf32> to vector<8x4xf32>
    %50 = arith.mulf %48, %49 : vector<8x4xf32>
    %51 = arith.addf %33, %50 : vector<8x4xf32>
    %52 = vector.extract_strided_slice %15 {offsets = [0, 2], sizes = [8, 1], strides = [1, 1]} : vector<8x3xf32> to vector<8x1xf32>
    %53 = vector.extract_strided_slice %51 {offsets = [2, 0], sizes = [1, 4], strides = [1, 1]} : vector<8x4xf32> to vector<1x4xf32>
    %54 = vector.extract_strided_slice %51 {offsets = [6, 0], sizes = [1, 4], strides = [1, 1]} : vector<8x4xf32> to vector<1x4xf32>
    %cst_17 = arith.constant 0.000000e+00 : f32
    %55 = vector.broadcast %cst_17 : f32 to vector<1x4xf32>
    %56 = arith.maximumf %54, %55 : vector<1x4xf32>
    %57 = math.absf %54 : vector<1x4xf32>
    %cst_18 = arith.constant 0.000000e+00 : f32
    %58 = vector.broadcast %cst_18 : f32 to vector<1x4xf32>
    %59 = arith.subf %58, %57 : vector<1x4xf32>
    %60 = math.exp %59 : vector<1x4xf32>
    %61 = math.log1p %60 : vector<1x4xf32>
    %62 = arith.addf %56, %61 : vector<1x4xf32>
    %63 = vector.extract_strided_slice %9 {offsets = [2, 0], sizes = [1, 4], strides = [1, 1]} : vector<4x4xf32> to vector<1x4xf32>
    %64 = arith.mulf %62, %63 : vector<1x4xf32>
    %65 = arith.addf %53, %64 : vector<1x4xf32>
    %66 = vector.broadcast %52 : vector<8x1xf32> to vector<8x4xf32>
    %67 = vector.broadcast %65 : vector<1x4xf32> to vector<8x4xf32>
    %68 = arith.mulf %66, %67 : vector<8x4xf32>
    %69 = arith.addf %51, %68 : vector<8x4xf32>
    %70 = vector.extract_strided_slice %69 {offsets = [0, 0], sizes = [4, 4], strides = [1, 1]} : vector<8x4xf32> to vector<4x4xf32>
    %71 = vector.extract_strided_slice %69 {offsets = [7, 0], sizes = [1, 4], strides = [1, 1]} : vector<8x4xf32> to vector<1x4xf32>
    %cst_19 = arith.constant 0.000000e+00 : f32
    %72 = vector.broadcast %cst_19 : f32 to vector<1x4xf32>
    %73 = arith.maximumf %71, %72 : vector<1x4xf32>
    %74 = math.absf %71 : vector<1x4xf32>
    %cst_20 = arith.constant 0.000000e+00 : f32
    %75 = vector.broadcast %cst_20 : f32 to vector<1x4xf32>
    %76 = arith.subf %75, %74 : vector<1x4xf32>
    %77 = math.exp %76 : vector<1x4xf32>
    %78 = math.log1p %77 : vector<1x4xf32>
    %79 = arith.addf %73, %78 : vector<1x4xf32>
    %80 = tpu.concatenate %26, %44, %62, %79 in 0 : vector<1x4xf32>, vector<1x4xf32>, vector<1x4xf32>, vector<1x4xf32> -> vector<4x4xf32>
    %81 = arith.mulf %80, %9 : vector<4x4xf32>
    %82 = arith.addf %70, %81 : vector<4x4xf32>
    %83 = tpu.concatenate %70, %80, %82 in 0 : vector<4x4xf32>, vector<4x4xf32>, vector<4x4xf32> -> vector<12x4xf32>
    %c0_21 = arith.constant 0 : index
    %c0_22 = arith.constant 0 : index
    %84 = vector.load %arg6[%c0_21, %c0_22] : memref<12x4xf32, #tpu.memory_space<vmem>>, vector<12x4xf32>
    tpu.vector_store %arg6[%c0_21, %c0_22], %83 {strides = array<i32>} : memref<12x4xf32, #tpu.memory_space<vmem>>, vector<12x4xf32>,
    return
  }
}

</mosaic_0001>

<bundles_post_ra>
// kernel: tpu_custom_call.1
= control target key start
LH: loop header
LB: loop body
LE: loop exit
PB: predicated region body
PF: predicated region fallthrough
CT: control target
= control target key end

     0   :  { %vm33_vm0 = vcmask 531456   ;;  %v2132_v0 = vmov 0.0   ;;  %vm2133_vm1 = vmmov 0   ;;  %vm925_vm2 = vcmask 523264   ;;  %s2649_s0 = inlined_call_operand.vmem [shape: f32[4,65], index: 0, kind: input, shape index: {}]   ;;  %s2650_s1 = inlined_call_operand.vmem [shape: f32[68,65], index: 1, kind: input, shape index: {}]   ;;  %s2651_s2 = inlined_call_operand.vmem [shape: f32[64,1], index: 2, kind: input, shape index: {}]   ;;  %s2652_s4 = inlined_call_operand.vmem [shape: f32[8,1], index: 4, kind: input, shape index: {}]   ;;  %s2653_s5 = inlined_call_operand.vmem [shape: f32[8,3], index: 5, kind: input, shape index: {}]   ;;  %s2654_s3 = inlined_call_operand.vmem [shape: f32[8,64], index: 3, kind: input, shape index: {}]   ;;  %s2655_s6 = inlined_call_operand.vmem [shape: f32[12,4], index: 6, kind: output, shape index: {}]  }
   0x1   :  { %1723 = vmatprep.subr.mxu1 %v2132_v0  ;;  %v23_v1 = vld [vmem:[%s2649_s0] sm:$0xf]  ;;  %1725 = vmatprep.mubr.msk.f32.mxu1 %vm2133_vm1, %v2132_v0  ;;  %v25_v3 = vld [vmem:[%s2650_s1 + $0x8] sm:$0xff]  ;;  %v26_v7 = vld [vmem:[%s2650_s1 + $0x10] sm:$0xff]  ;;  %vm1588_vm5 = vcmask 1040384   ;;  %vm1590_vm7 = vcmask 1041408  }
   0x2   :  { %v24_v2 = vld [vmem:[%s2650_s1] sm:$0xff]  ;;  %v62_v4 = vsel %vm33_vm0, %v23_v1, 0  ;;  %1752 = vmatprep.subr.mxu0 %v2132_v0  ;;  %1754 = vmatprep.mubr.msk.f32.mxu0 %vm2133_vm1, %v2132_v0  ;;  %v38_v6 = vsel %vm33_vm0, %v25_v3, 0  ;;  %v27_v8 = vld [vmem:[%s2650_s1 + $0x18] sm:$0xff]  ;;  %v41_v13 = vsel %vm33_vm0, %v26_v7, 0  ;;  %v29_v21 = vld [vmem:[%s2650_s1 + $0x28] sm:$0xff] }
   0x3   :  { %v35_v5 = vsel %vm33_vm0, %v24_v2, 0  ;;  %v28_v9 = vld [vmem:[%s2650_s1 + $0x20] sm:$0xff]  ;;  %v2200_v10 = vand.u32 4294901760, %v62_v4  ;;  %v2204_v12 = vand.u32 4294901760, %v38_v6  ;;  %v2207_v14 = vand.u32 4294901760, %v41_v13  ;;  %v30_v35 = vld [vmem:[%s2650_s1 + $0x30] sm:$0xff] }
   0x4   :  { %v2202_v11 = vand.u32 4294901760, %v35_v5  ;;  %v44_v15 = vsel %vm33_vm0, %v27_v8, 0  ;;  %v47_v16 = vsel %vm33_vm0, %v28_v9, 0  ;;  %v50_v28 = vsel %vm33_vm0, %v29_v21, 0  ;;  %v31_v42 = vld [vmem:[%s2650_s1 + $0x38] sm:$0xff]  ;;  %v855_v8 = vld [vmem:[%s2651_s2 + $0x8] sm:$0xff] }
   0x5   :  { %1724 = vmatpush3.xpose.msra.mxu1 %v2200_v10  ;;  %v2216_v18 = vsub.f32 %v62_v4, %v2200_v10  ;;  %v2219_v19 = vsub.f32 %v38_v6, %v2204_v12  ;;  %v2221_v20 = vand.u32 4294901760, %v44_v15  ;;  %v2227_v22 = vsub.f32 %v41_v13, %v2207_v14  ;;  %v32_v49 = vld [vmem:[%s2650_s1 + $0x40] sm:$0xf]  ;;  %v856_v6 = vld [vmem:[%s2651_s2 + $0x10] sm:$0xff] }
   0x6   :  { %v2213_v17 = vsub.f32 %v35_v5, %v2202_v11  ;;  %2083 = vmatprep.subr.mxu1 %v2132_v0  ;;  %v2236_v27 = vand.u32 4294901760, %v47_v16  ;;  %v2252_v36 = vand.u32 4294901760, %v50_v28  ;;  %v53_v41 = vsel %vm33_vm0, %v30_v35, 0  ;;  %v854_v5 = vld [vmem:[%s2651_s2] sm:$0xff] }
   0x7   :  { %v223_v24 = vand.u32 4294901760, %v2216_v18  ;;  %v142_v25 = vand.u32 4294901760, %v2219_v19  ;;  %v2234_v26 = vsub.f32 %v44_v15, %v2221_v20  ;;  %v152_v32 = vand.u32 4294901760, %v2227_v22  ;;  %v857_v15 = vld [vmem:[%s2651_s2 + $0x18] sm:$0xff] }
   0x8   :  { %v132_v23 = vand.u32 4294901760, %v2213_v17  ;;  %v2259_v40 = vsub.f32 %v47_v16, %v2236_v27  ;;  %v2270_v43 = vsub.f32 %v50_v28, %v2252_v36  ;;  %v2277_v47 = vand.u32 4294901760, %v53_v41  ;;  %v858_v16 = vld [vmem:[%s2651_s2 + $0x20] sm:$0xff]  ;;  %v859_v28 = vld [vmem:[%s2651_s2 + $0x28] sm:$0xff] }
   0x9   :  { %v224_v30 = vsub.f32 %v2216_v18, %v223_v24  ;;  %v143_v31 = vsub.f32 %v2219_v19, %v142_v25  ;;  %v153_v38 = vsub.f32 %v2227_v22, %v152_v32  ;;  %v162_v39 = vand.u32 4294901760, %v2234_v26 }
   0xa   :  { %v133_v29 = vsub.f32 %v2213_v17, %v132_v23  ;;  %v172_v46 = vand.u32 4294901760, %v2259_v40  ;;  %v56_v48 = vsel %vm33_vm0, %v31_v42, 0  ;;  %v182_v50 = vand.u32 4294901760, %v2270_v43 }
   0xb   :  { %v225_v34 = vand.u32 4294901760, %v224_v30  ;;  %v144_v37 = vand.u32 4294901760, %v143_v31  ;;  %v154_v44 = vand.u32 4294901760, %v153_v38  ;;  %v163_v45 = vsub.f32 %v2234_v26, %v162_v39  ;;  %v861_v30 = vld [vmem:[%s2651_s2 + $0x38] sm:$0xff]  ;;  %v919_v31 = vld [vmem:[%s2652_s4] sm:$0xff] }
   0xc   :  { %v134_v33 = vand.u32 4294901760, %v133_v29  ;;  %v173_v52 = vsub.f32 %v2259_v40, %v172_v46  ;;  %v2296_v53 = vsub.f32 %v53_v41, %v2277_v47  ;;  %v2298_v54 = vand.u32 4294901760, %v56_v48  ;;  %v860_v29 = vld [vmem:[%s2651_s2 + $0x30] sm:$0xff] }
   0xd   :  { %1753 = vmatpush3.xpose.msra.mxu0 %v225_v34  ;;  %v164_v51 = vand.u32 4294901760, %v163_v45  ;;  %v59_v55 = vsel %vm33_vm0, %v32_v49, 0  ;;  %v183_v56 = vsub.f32 %v2270_v43, %v182_v50  ;;  %v2134_v7 = vmov 0  }
   0xe   :  { %1726 = vmatmul.mubr.f32.vlgmr.msra.gmra.mrb[0].mxu1 %v134_v33  ;;  %1781 = vmatprep.subr.mxu0 %v2132_v0  ;;  %v174_v57 = vand.u32 4294901760, %v173_v52  ;;  %v192_v58 = vand.u32 4294901760, %v2296_v53  ;;  %v2313_v59 = vsub.f32 %v56_v48, %v2298_v54  ;;  %v2315_v60 = vand.u32 4294901760, %v59_v55  ;;  %v2392_v33 = vld [vmem:[%s2653_s5] sm:$0xff] }
   0xf   :  { %1728 = vmatprep.mubr.msk.f32.mxu1 %vm2133_vm1, %v2132_v0  ;;  %2084 = vmatpush3.xpose.msra.mxu1 %v225_v34  ;;  %v184_v61 = vand.u32 4294901760, %v183_v56  ;;  %vm1592_vm9 = vcmask 1042432   ;;  %vm1599_vm10 = vcmask 1043456   ;;  %vm1601_vm11 = vcmask 31744  }
  0x10   :  { %1755 = vmatmul.mubr.f32.vlgmr.msra.gmra.mrb[0].mxu0 %v2202_v11  ;;  %v193_v62 = vsub.f32 %v2296_v53, %v192_v58  ;;  %v202_v63 = vand.u32 4294901760, %v2313_v59  ;;  %v2327_v1 = vsub.f32 %v59_v55, %v2315_v60  ;;  %2111 = vset.pattern.permute.xlu0 %v2134_v7  ;;  %vm1603_vm12 = vcmask 27648  }
  0x11   :  { %1782 = vmatpush3.xpose.msra.mxu0 %v2216_v18  ;;  %1783 = vmatprep.mubr.msk.f32.mxu0 %vm2133_vm1, %v2132_v0 }
  0x12   :  { %1729 = vmatmul.mubr.f32.gmra.mrb[2].mxu1 %v144_v37  ;;  %1810 = vmatprep.subr.mxu0 %v2132_v0  ;;  %v194_v2 = vand.u32 4294901760, %v193_v62  ;;  %v203_v3 = vsub.f32 %v2313_v59, %v202_v63  ;;  %v212_v4 = vand.u32 4294901760, %v2327_v1 }
  0x13   :  { %1731 = vmatprep.mubr.msk.f32.mxu1 %vm2133_vm1, %v2132_v0  ;;  %864 = vperm.xlu0 %2111, %v854_v5  }
  0x14   :  { %1784 = vmatmul.mubr.f32.vlgmr.msra.gmra.mrb[2].mxu0 %v2213_v17  ;;  %2112 = vset.pattern.permute.xlu1 %v2134_v7  ;;  %v204_v9 = vand.u32 4294901760, %v203_v3  ;;  %v213_v13 = vsub.f32 %v2327_v1, %v212_v4 }
  0x15   :  { %1786 = vmatprep.mubr.msk.f32.mxu0 %vm2133_vm1, %v2132_v0  ;;  %1811 = vmatpush3.xpose.msra.mxu0 %v2200_v10 }
  0x16   :  { %1732 = vmatmul.mubr.f32.gmra.mrb[4].mxu1 %v154_v44  ;;  %1839 = vmatprep.subr.mxu0 %v2132_v0  ;;  %v214_v21 = vand.u32 4294901760, %v213_v13 }
  0x17   :  { %1734 = vmatprep.mubr.msk.f32.mxu1 %vm2133_vm1, %v2132_v0  ;;  %874 = vperm.xlu1 %2112, %v856_v6  }
  0x18   :  { %1787 = vmatmul.mubr.f32.gmra.mrb[4].mxu0 %v2219_v19  ;;  %869 = vperm.xlu0 %2111, %v855_v8  }
  0x19   :  { %1789 = vmatprep.mubr.msk.f32.mxu0 %vm2133_vm1, %v2132_v0 }
  0x1a   :  { %1735 = vmatmul.mubr.f32.gmra.mrb[6].mxu1 %v164_v51 }
  0x1b   :  { %1737 = vmatprep.mubr.msk.f32.mxu1 %vm2133_vm1, %v2132_v0  ;;  %879 = vperm.xlu1 %2112, %v857_v15  }
  0x1c   :  { %1790 = vmatmul.mubr.f32.gmra.mrb[6].mxu0 %v2227_v22  ;;  %884 = vperm.xlu0 %2111, %v858_v16  }
  0x1d   :  { %1792 = vmatprep.mubr.msk.f32.mxu0 %vm2133_vm1, %v2132_v0 }
  0x1e   :  { %1738 = vmatmul.mubr.f32.gmra.mrb[8].mxu1 %v174_v57 }
  0x1f   :  { %1740 = vmatprep.mubr.msk.f32.mxu1 %vm2133_vm1, %v2132_v0  ;;  %889 = vperm.xlu1 %2112, %v859_v28  }
  0x20   :  { %1793 = vmatmul.mubr.f32.gmra.mrb[8].mxu0 %v2234_v26  ;;  %894 = vperm.xlu0 %2111, %v860_v29  }
  0x21   :  { %1795 = vmatprep.mubr.msk.f32.mxu0 %vm2133_vm1, %v2132_v0 }
  0x22   :  { %1741 = vmatmul.mubr.f32.gmra.mrb[10].mxu1 %v184_v61 }
  0x23   :  { %1743 = vmatprep.mubr.msk.f32.mxu1 %vm2133_vm1, %v2132_v0  ;;  %899 = vperm.xlu1 %2112, %v861_v30  }
  0x24   :  { %1796 = vmatmul.mubr.f32.gmra.mrb[10].mxu0 %v2259_v40  ;;  %922 = vperm.xlu0 %2111, %v919_v31  }
  0x25   :  { %1798 = vmatprep.mubr.msk.f32.mxu0 %vm2133_vm1, %v2132_v0 }
  0x26   :  { %1744 = vmatmul.mubr.f32.gmra.mrb[12].mxu1 %v194_v2 }
  0x27   :  { %1746 = vmatprep.mubr.msk.f32.mxu1 %vm2133_vm1, %v2132_v0  ;;  %1492 = vperm.xlu1 %2112, %v2392_v33  }
  0x28   :  { %1799 = vmatmul.mubr.f32.gmra.mrb[12].mxu0 %v2270_v43 }
  0x29   :  { %1801 = vmatprep.mubr.msk.f32.mxu0 %vm2133_vm1, %v2132_v0 }
  0x2a   :  { %1747 = vmatmul.mubr.f32.gmra.mrb[14].mxu1 %v204_v9 }
  0x2b   :  { %1749 = vmatprep.mubr.msk.f32.mxu1 %vm2133_vm1, %v2132_v0 }
  0x2c   :  { %1802 = vmatmul.mubr.f32.gmra.mrb[14].mxu0 %v2296_v53 }
  0x2d   :  { %1804 = vmatprep.mubr.msk.f32.mxu0 %vm2133_vm1, %v2132_v0 }
  0x2e   :  { %1750 = vmatmul.mubr.f32.gmra.mrb[16].mxu1 %v214_v21 }
  0x2f   :  { %1757 = vmatprep.mubr.msk.f32.mxu1 %vm2133_vm1, %v2132_v0 }
  0x30   :  { %1805 = vmatmul.mubr.f32.gmra.mrb[16].mxu0 %v2313_v59 }
  0x31   :  { %1807 = vmatprep.mubr.msk.f32.mxu0 %vm2133_vm1, %v2132_v0 }
  0x32   :  { %1758 = vmatmul.mubr.f32.vlgmr.msra.gmra.mrb[18].mxu1 %v2204_v12 }
  0x33   :  { %1760 = vmatprep.mubr.msk.f32.mxu1 %vm2133_vm1, %v2132_v0 }
  0x34   :  { %1808 = vmatmul.mubr.f32.gmra.mrb[18].mxu0 %v2327_v1 }
  0x35   :  { %1812 = vmatprep.mubr.msk.f32.mxu0 %vm2133_vm1, %v2132_v0 }
  0x36   :  { %1761 = vmatmul.mubr.f32.gmra.mrb[20].mxu1 %v2207_v14 }
  0x37   :  { %1763 = vmatprep.mubr.msk.f32.mxu1 %vm2133_vm1, %v2132_v0 }
  0x38   :  { %1813 = vmatmul.mubr.f32.vlgmr.msra.gmra.mrb[20].mxu0 %v132_v23 }
  0x39   :  { %1815 = vmatprep.mubr.msk.f32.mxu0 %vm2133_vm1, %v2132_v0  ;;  %1840 = vmatpush3.xpose.msra.mxu0 %v223_v24 }
  0x3a   :  { %1764 = vmatmul.mubr.f32.gmra.mrb[22].mxu1 %v2221_v20  ;;  %1868 = vmatprep.subr.mxu0 %v2132_v0 }
  0x3b   :  { %1766 = vmatprep.mubr.msk.f32.mxu1 %vm2133_vm1, %v2132_v0 }
  0x3c   :  { %1816 = vmatmul.mubr.f32.gmra.mrb[22].mxu0 %v142_v25 }
  0x3d   :  { %1818 = vmatprep.mubr.msk.f32.mxu0 %vm2133_vm1, %v2132_v0 }
  0x3e   :  { %1767 = vmatmul.mubr.f32.gmra.mrb[24].mxu1 %v2236_v27 }
  0x3f   :  { %1769 = vmatprep.mubr.msk.f32.mxu1 %vm2133_vm1, %v2132_v0 }
  0x40   :  { %1819 = vmatmul.mubr.f32.gmra.mrb[24].mxu0 %v152_v32 }
  0x41   :  { %1821 = vmatprep.mubr.msk.f32.mxu0 %vm2133_vm1, %v2132_v0 }
  0x42   :  { %1770 = vmatmul.mubr.f32.gmra.mrb[26].mxu1 %v2252_v36 }
  0x43   :  { %1772 = vmatprep.mubr.msk.f32.mxu1 %vm2133_vm1, %v2132_v0 }
  0x44   :  { %1822 = vmatmul.mubr.f32.gmra.mrb[26].mxu0 %v162_v39 }
  0x45   :  { %1824 = vmatprep.mubr.msk.f32.mxu0 %vm2133_vm1, %v2132_v0 }
  0x46   :  { %1773 = vmatmul.mubr.f32.gmra.mrb[28].mxu1 %v2277_v47 }
  0x47   :  { %1775 = vmatprep.mubr.msk.f32.mxu1 %vm2133_vm1, %v2132_v0 }
  0x48   :  { %1825 = vmatmul.mubr.f32.gmra.mrb[28].mxu0 %v172_v46 }
  0x49   :  { %1827 = vmatprep.mubr.msk.f32.mxu0 %vm2133_vm1, %v2132_v0 }
  0x4a   :  { %1776 = vmatmul.mubr.f32.gmra.mrb[30].mxu1 %v2298_v54 }
  0x4b   :  { %1778 = vmatprep.mubr.msk.f32.mxu1 %vm2133_vm1, %v2132_v0 }
  0x4c   :  { %1828 = vmatmul.mubr.f32.gmra.mrb[30].mxu0 %v182_v50 }
  0x4d   :  { %1830 = vmatprep.mubr.msk.f32.mxu0 %vm2133_vm1, %v2132_v0 }
  0x4e   :  { %1779 = vmatmul.mubr.f32.gmra.mrb[16].mxu1 %v2315_v60 }
  0x4f   :  { %1913 = vmatprep.mubr.msk.f32.mxu1 %vm2133_vm1, %v2132_v0 }
  0x50   :  { %1831 = vmatmul.mubr.f32.gmra.mrb[32].mxu0 %v192_v58 }
  0x51   :  { %1833 = vmatprep.mubr.msk.f32.mxu0 %vm2133_vm1, %v2132_v0 }
  0x54   :  { %1834 = vmatmul.mubr.f32.gmra.mrb[34].mxu0 %v202_v63 }
  0x55   :  { %1836 = vmatprep.mubr.msk.f32.mxu0 %vm2133_vm1, %v2132_v0 }
  0x58   :  { %1837 = vmatmul.mubr.f32.gmra.mrb[18].mxu0 %v212_v4 }
  0x59   :  { %1841 = vmatprep.mubr.msk.f32.mxu0 %vm2133_vm1, %v2132_v0 }
  0x5c   :  { %1842 = vmatmul.mubr.f32.vlgmr.msra.gmra.mrb[36].mxu0 %v2202_v11 }
  0x5d   :  { %1844 = vmatprep.mubr.msk.f32.mxu0 %vm2133_vm1, %v2132_v0  ;;  %1869 = vmatpush3.xpose.msra.mxu0 %v2200_v10 }
  0x60   :  { %1845 = vmatmul.mubr.f32.gmra.mrb[38].mxu0 %v2204_v12 }
  0x61   :  { %1847 = vmatprep.mubr.msk.f32.mxu0 %vm2133_vm1, %v2132_v0 }
  0x64   :  { %1848 = vmatmul.mubr.f32.gmra.mrb[40].mxu0 %v2207_v14 }
  0x65   :  { %1850 = vmatprep.mubr.msk.f32.mxu0 %vm2133_vm1, %v2132_v0 }
  0x68   :  { %1851 = vmatmul.mubr.f32.gmra.mrb[42].mxu0 %v2221_v20 }
  0x69   :  { %1853 = vmatprep.mubr.msk.f32.mxu0 %vm2133_vm1, %v2132_v0 }
  0x6c   :  { %1854 = vmatmul.mubr.f32.gmra.mrb[44].mxu0 %v2236_v27 }
  0x6d   :  { %1856 = vmatprep.mubr.msk.f32.mxu0 %vm2133_vm1, %v2132_v0 }
  0x70   :  { %1857 = vmatmul.mubr.f32.gmra.mrb[46].mxu0 %v2252_v36 }
  0x71   :  { %1859 = vmatprep.mubr.msk.f32.mxu0 %vm2133_vm1, %v2132_v0 }
  0x74   :  { %1860 = vmatmul.mubr.f32.gmra.mrb[48].mxu0 %v2277_v47 }
  0x75   :  { %1862 = vmatprep.mubr.msk.f32.mxu0 %vm2133_vm1, %v2132_v0 }
  0x78   :  { %1863 = vmatmul.mubr.f32.gmra.mrb[50].mxu0 %v2298_v54 }
  0x79   :  { %1865 = vmatprep.mubr.msk.f32.mxu0 %vm2133_vm1, %v2132_v0 }
  0x7c   :  { %1866 = vmatmul.mubr.f32.gmra.mrb[18].mxu0 %v2315_v60 }
  0x7d   :  { %1870 = vmatprep.mubr.msk.f32.mxu0 %vm2133_vm1, %v2132_v0 }
  0x80   :  { %1871 = vmatmul.mubr.f32.vlgmr.msra.gmra.mrb[52].mxu0 %v2202_v11 }
  0x81   :  { %1873 = vmatprep.mubr.msk.f32.mxu0 %vm2133_vm1, %v2132_v0 }
  0x84   :  { %1874 = vmatmul.mubr.f32.gmra.mrb[54].mxu0 %v2204_v12  ;;  %v2135_v12 = vmov 0.0|0.0  }
  0x85   :  { %1876 = vmatprep.mubr.msk.f32.mxu0 %vm2133_vm1, %v2132_v0  ;;  %2011 = vmatprep.subr.bf16.mxu1 %v2135_v12 }
  0x88   :  { %1877 = vmatmul.mubr.f32.gmra.mrb[56].mxu0 %v2207_v14 }
  0x89   :  { %1879 = vmatprep.mubr.msk.f32.mxu0 %vm2133_vm1, %v2132_v0 }
  0x8c   :  { %1880 = vmatmul.mubr.f32.gmra.mrb[58].mxu0 %v2221_v20 }
  0x8d   :  { %1882 = vmatprep.mubr.msk.f32.mxu0 %vm2133_vm1, %v2132_v0 }
  0x90   :  { %1883 = vmatmul.mubr.f32.gmra.mrb[60].mxu0 %v2236_v27 }
  0x91   :  { %1885 = vmatprep.mubr.msk.f32.mxu0 %vm2133_vm1, %v2132_v0 }
  0x94   :  { %1886 = vmatmul.mubr.f32.gmra.mrb[62].mxu0 %v2252_v36 }
  0x95   :  { %1888 = vmatprep.mubr.msk.f32.mxu0 %vm2133_vm1, %v2132_v0 }
  0x98   :  { %1889 = vmatmul.mubr.f32.gmra.mrb[64].mxu0 %v2277_v47 }
  0x99   :  { %1891 = vmatprep.mubr.msk.f32.mxu0 %vm2133_vm1, %v2132_v0 }
  0x9c   :  { %1892 = vmatmul.mubr.f32.gmra.mrb[66].mxu0 %v2298_v54 }
  0x9d   :  { %1894 = vmatprep.mubr.msk.f32.mxu0 %vm2133_vm1, %v2132_v0 }
  0xa0   :  { %1895 = vmatmul.mubr.f32.gmra.mrb[18].mxu0 %v2315_v60 }
  0xe1   :  { %v136_v10 = vpop.f32.mrb[0].mxu1 }
  0xe2   :  { %v1727_v11 = vpop.f32.mrb[1].mxu1 }
  0xe3   :  { %v292_v14 = vpop.f32.mrb[0].mxu0 }
  0xe4   :  { %v293_v17 = vadd.f32 %v292_v14, %v136_v10  ;;  %v1756_v18 = vpop.f32.mrb[1].mxu0 }
  0xe5   :  { %v146_v19 = vpop.f32.mrb[2].mxu1 }
  0xe6   :  { %v1730_v20 = vpop.f32.mrb[3].mxu1 }
  0xe7   :  { %v414_v22 = vpop.f32.mrb[2].mxu0 }
  0xe8   :  { %v415_v23 = vadd.f32 %v414_v22, %v293_v17  ;;  %v1785_v24 = vpop.f32.mrb[3].mxu0 }
  0xe9   :  { %v156_v25 = vpop.f32.mrb[4].mxu1 }
  0xea   :  { %v1733_v26 = vpop.f32.mrb[5].mxu1 }
  0xeb   :  { %v421_v27 = vpop.f32.mrb[4].mxu0 }
  0xec   :  { %v1788_v32 = vpop.f32.mrb[5].mxu0 }
  0xed   :  { %v166_v34 = vpop.f32.mrb[6].mxu1 }
  0xee   :  { %v1736_v35 = vpop.f32.mrb[7].mxu1 }
  0xef   :  { %v428_v36 = vpop.f32.mrb[6].mxu0 }
  0xf0   :  { %v1791_v37 = vpop.f32.mrb[7].mxu0 }
  0xf1   :  { %v176_v38 = vpop.f32.mrb[8].mxu1 }
  0xf2   :  { %v1739_v39 = vpop.f32.mrb[9].mxu1 }
  0xf3   :  { %v435_v40 = vpop.f32.mrb[8].mxu0 }
  0xf4   :  { %v1794_v41 = vpop.f32.mrb[9].mxu0 }
  0xf5   :  { %v186_v42 = vpop.f32.mrb[10].mxu1 }
  0xf6   :  { %v1742_v43 = vpop.f32.mrb[11].mxu1 }
  0xf7   :  { %v442_v44 = vpop.f32.mrb[10].mxu0 }
  0xf8   :  { %v1797_v45 = vpop.f32.mrb[11].mxu0 }
  0xf9   :  { %v196_v46 = vpop.f32.mrb[12].mxu1 }
  0xfa   :  { %v1745_v47 = vpop.f32.mrb[13].mxu1 }
  0xfb   :  { %v449_v48 = vpop.f32.mrb[12].mxu0 }
  0xfc   :  { %v1800_v49 = vpop.f32.mrb[13].mxu0 }
  0xfd   :  { %v206_v50 = vpop.f32.mrb[14].mxu1 }
  0xfe   :  { %v1748_v51 = vpop.f32.mrb[15].mxu1 }
  0xff   :  { %v456_v52 = vpop.f32.mrb[14].mxu0 }
 0x100   :  { %v1803_v53 = vpop.f32.mrb[15].mxu0 }
 0x103   :  { %v463_v54 = vpop.f32.mrb[16].mxu0 }
 0x104   :  { %v1806_v56 = vpop.f32.mrb[17].mxu0 }
 0x105   :  { %v298_v55 = vpop.f32.mrb[18].mxu1 }
 0x106   :  { %v299_v57 = vadd.f32 %v298_v55, %v146_v19  ;;  %v1759_v58 = vpop.f32.mrb[19].mxu1 }
 0x108   :  { %v422_v59 = vadd.f32 %v421_v27, %v299_v57 }
 0x109   :  { %v304_v60 = vpop.f32.mrb[20].mxu1 }
 0x10a   :  { %v305_v61 = vadd.f32 %v304_v60, %v156_v25  ;;  %v1762_v62 = vpop.f32.mrb[21].mxu1 }
 0x10b   :  { %v544_v63 = vpop.f32.mrb[20].mxu0 }
 0x10c   :  { %v429_v1 = vadd.f32 %v428_v36, %v305_v61  ;;  %v545_v2 = vadd.f32 %v544_v63, %v415_v23  ;;  %v1814_v4 = vpop.f32.mrb[21].mxu0 }
 0x10d   :  { %v310_v3 = vpop.f32.mrb[22].mxu1 }
 0x10e   :  { %v311_v5 = vadd.f32 %v310_v3, %v166_v34  ;;  %v1765_v6 = vpop.f32.mrb[23].mxu1 }
 0x10f   :  { %v552_v7 = vpop.f32.mrb[22].mxu0 }
 0x110   :  { %v436_v8 = vadd.f32 %v435_v40, %v311_v5  ;;  %v553_v9 = vadd.f32 %v552_v7, %v422_v59  ;;  %v1817_v15 = vpop.f32.mrb[23].mxu0 }
 0x111   :  { %v316_v13 = vpop.f32.mrb[24].mxu1  ;;  %v865_v15 = vpop.permute.xlu0 %864 }
 0x112   :  { %v317_v16 = vadd.f32 %v316_v13, %v176_v38  ;;  %v1768_v21 = vpop.f32.mrb[25].mxu1  ;;  %v2136_v13 = vmov 1  }
 0x113   :  { %v560_v28 = vpop.f32.mrb[24].mxu0  ;;  %2113 = vset.pattern.permute.xlu0 %v2136_v13 }
 0x114   :  { %v443_v29 = vadd.f32 %v442_v44, %v317_v16  ;;  %v561_v30 = vadd.f32 %v560_v28, %v429_v1  ;;  %v1820_v10 = vpop.f32.mrb[25].mxu0  ;;  %1522 = vperm.xlu0 %2113, %v2392_v33  }
 0x115   :  { %v322_v31 = vpop.f32.mrb[26].mxu1 }
 0x116   :  { %v323_v11 = vadd.f32 %v322_v31, %v186_v42  ;;  %v1771_v14 = vpop.f32.mrb[27].mxu1 }
 0x117   :  { %v568_v17 = vpop.f32.mrb[26].mxu0  ;;  %v870_v14 = vpop.permute.xlu0 %869 }
 0x118   :  { %v450_v18 = vadd.f32 %v449_v48, %v323_v11  ;;  %v569_v19 = vadd.f32 %v568_v17, %v436_v8  ;;  %v1823_v22 = vpop.f32.mrb[27].mxu0 }
 0x119   :  { %v328_v20 = vpop.f32.mrb[28].mxu1 }
 0x11a   :  { %v329_v23 = vadd.f32 %v328_v20, %v196_v46  ;;  %v1774_v24 = vpop.f32.mrb[29].mxu1  ;;  %v875_v20 = vpop.permute.xlu1 %874 }
 0x11b   :  { %v576_v25 = vpop.f32.mrb[28].mxu0 }
 0x11c   :  { %v457_v26 = vadd.f32 %v456_v52, %v329_v23  ;;  %v577_v27 = vadd.f32 %v576_v25, %v443_v29  ;;  %v1826_v34 = vpop.f32.mrb[29].mxu0 }
 0x11d   :  { %v334_v32 = vpop.f32.mrb[30].mxu1 }
 0x11e   :  { %v335_v35 = vadd.f32 %v334_v32, %v206_v50  ;;  %v1777_v36 = vpop.f32.mrb[31].mxu1 }
 0x11f   :  { %v584_v37 = vpop.f32.mrb[30].mxu0 }
 0x120   :  { %v464_v38 = vadd.f32 %v463_v54, %v335_v35  ;;  %v585_v39 = vadd.f32 %v584_v37, %v450_v18  ;;  %v1829_v40 = vpop.f32.mrb[31].mxu0 }
 0x121   :  { %v2514_v41 = vpop.f32.mrb[16].mxu1  ;;  %v880_v40 = vpop.permute.xlu1 %879 }
 0x122   :  { %v1780_v42 = vpop.f32.mrb[17].mxu1 }
 0x123   :  { %v592_v43 = vpop.f32.mrb[32].mxu0 }
 0x124   :  { %v593_v44 = vadd.f32 %v592_v43, %v457_v26  ;;  %v1832_v45 = vpop.f32.mrb[33].mxu0 }
 0x127   :  { %v600_v47 = vpop.f32.mrb[34].mxu0 }
 0x128   :  { %v601_v46 = vadd.f32 %v600_v47, %v464_v38  ;;  %v1835_v48 = vpop.f32.mrb[35].mxu0 }
 0x129   :  { %v918_v48 = vld [vmem:[%s2654_s3] sm:$0xff] }
 0x12f   :  { %v682_v49 = vpop.f32.mrb[36].mxu0 }
 0x130   :  { %v683_v51 = vadd.f32 %v682_v49, %v545_v2  ;;  %v1843_v52 = vpop.f32.mrb[37].mxu0 }
 0x133   :  { %v688_v53 = vpop.f32.mrb[38].mxu0 }
 0x134   :  { %v689_v55 = vadd.f32 %v688_v53, %v553_v9  ;;  %v1846_v50 = vpop.f32.mrb[39].mxu0 }
 0x135   :  { %v885_v50 = vpop.permute.xlu0 %884 }
 0x137   :  { %v694_v56 = vpop.f32.mrb[40].mxu0 }
 0x138   :  { %v695_v57 = vadd.f32 %v694_v56, %v561_v30  ;;  %v1849_v54 = vpop.f32.mrb[41].mxu0 }
 0x139   :  { %v927_v54 = vsel %vm925_vm2, %v918_v48, 0 }
 0x13a   :  { %v2552_v13 = vand.u32 4294901760, %v927_v54 }
 0x13b   :  { %v700_v58 = vpop.f32.mrb[42].mxu0 }
 0x13c   :  { %v701_v59 = vadd.f32 %v700_v58, %v569_v19  ;;  %v1852_v60 = vpop.f32.mrb[43].mxu0 }
 0x13f   :  { %v706_v61 = vpop.f32.mrb[44].mxu0 }
 0x140   :  { %v707_v62 = vadd.f32 %v706_v61, %v577_v27  ;;  %v1855_v63 = vpop.f32.mrb[45].mxu0 }
 0x143   :  { %v712_v1 = vpop.f32.mrb[46].mxu0 }
 0x144   :  { %v2516_v3 = vadd.f32 %v712_v1, %v585_v39  ;;  %v1858_v4 = vpop.f32.mrb[47].mxu0 }
 0x147   :  { %v718_v5 = vpop.f32.mrb[48].mxu0 }
 0x148   :  { %v2518_v6 = vadd.f32 %v718_v5, %v593_v44  ;;  %v1861_v2 = vpop.f32.mrb[49].mxu0 }
 0x14b   :  { %v724_v7 = vpop.f32.mrb[50].mxu0 }
 0x14c   :  { %v2520_v8 = vadd.f32 %v724_v7, %v601_v46  ;;  %v1864_v9 = vpop.f32.mrb[51].mxu0 }
 0x153   :  { %v802_v16 = vpop.f32.mrb[52].mxu0 }
 0x154   :  { %v803_v21 = vadd.f32 %v802_v16, %v683_v51  ;;  %v1872_v28 = vpop.f32.mrb[53].mxu0 }
 0x156   :  { %v902_v29 = vadd.f32 %v865_v15, %v803_v21 }
 0x157   :  { %v808_v30 = vpop.f32.mrb[54].mxu0 }
 0x158   :  { %v910_v31 = vmax.f32 %v902_v29, 0.0  ;;  %v809_v10 = vadd.f32 %v808_v30, %v689_v55  ;;  %v1875_v11 = vpop.f32.mrb[55].mxu0 }
 0x15a   :  { %v930_v17 = vand.u32 4294901760, %v910_v31  ;;  %v903_v18 = vadd.f32 %v870_v14, %v809_v10  ;;  %v895_v14 = vpop.permute.xlu0 %894 }
 0x15b   :  { %v814_v19 = vpop.f32.mrb[56].mxu0 }
 0x15c   :  { %v2523_v22 = vsub.f32 %v910_v31, %v930_v17  ;;  %v911_v23 = vmax.f32 %v903_v18, 0.0  ;;  %v815_v24 = vadd.f32 %v814_v19, %v695_v57  ;;  %v1878_v25 = vpop.f32.mrb[57].mxu0  ;;  %v2565_v18 = vsub.f32 %v927_v54, %v2552_v13 }
 0x15e   :  { %v1015_v26 = vand.u32 4294901760, %v2523_v22  ;;  %v933_v27 = vand.u32 4294901760, %v911_v23  ;;  %v904_v32 = vadd.f32 %v875_v20, %v815_v24 }
 0x15f   :  { %v820_v34 = vpop.f32.mrb[58].mxu0 }
 0x160   :  { %v2526_v35 = vpack.c.bf16 %v933_v27, %v930_v17  ;;  %v2528_v36 = vsub.f32 %v911_v23, %v933_v27  ;;  %v912_v37 = vmax.f32 %v904_v32, 0.0  ;;  %v1881_v38 = vpop.f32.mrb[59].mxu0  ;;  %v821_v39 = vadd.f32 %v820_v34, %v701_v59 }
 0x161   :  { %v1016_v42 = vsub.f32 %v2523_v22, %v1015_v26 }
 0x162   :  { %v1022_v43 = vand.u32 4294901760, %v2528_v36  ;;  %v936_v44 = vand.u32 4294901760, %v912_v37  ;;  %2013 = vmatpush3.bf16.msra.mxu1 %v2526_v35  ;;  %v2036_v45 = vpack.c.bf16 %v2528_v36, %v2523_v22  ;;  %v905_v47 = vadd.f32 %v880_v40, %v821_v39 }
 0x163   :  { %v826_v46 = vpop.f32.mrb[60].mxu0  ;;  %2014 = vmatprep.subr.bf16.mxu1 %v2135_v12  ;;  %v1017_v58 = vand.u32 4294901760, %v1016_v42  ;;  %v1004_v39 = vand.u32 4294901760, %v2565_v18  ;;  %v2137_v22 = vmov 2  }
 0x164   :  { %v1023_v49 = vsub.f32 %v2528_v36, %v1022_v43  ;;  %v2540_v51 = vsub.f32 %v912_v37, %v936_v44  ;;  %v827_v52 = vadd.f32 %v826_v46, %v707_v62  ;;  %v1884_v53 = vpop.f32.mrb[61].mxu0  ;;  %v2542_v55 = vpack.c.bf16 %v1022_v43, %v1015_v26  ;;  %v890_v62 = vpop.permute.xlu1 %889  ;;  %2114 = vset.pattern.permute.xlu1 %v2137_v22 }
 0x165   :  { %v913_v56 = vmax.f32 %v905_v47, 0.0  ;;  %v1005_v54 = vsub.f32 %v2565_v18, %v1004_v39  ;;  %2115 = vset.pattern.permute.xlu0 %v2137_v22  ;;  %1552 = vperm.xlu1 %2114, %v2392_v33  }
 0x166   :  { %v906_v57 = vadd.f32 %v885_v50, %v827_v52  ;;  %v1024_v59 = vand.u32 4294901760, %v1023_v49  ;;  %v1029_v60 = vand.u32 4294901760, %v2540_v51 }
 0x167   :  { %v939_v61 = vand.u32 4294901760, %v913_v56  ;;  %v832_v63 = vpop.f32.mrb[62].mxu0 }
 0x168   :  { %v914_v1 = vmax.f32 %v906_v57, 0.0  ;;  %v833_v4 = vadd.f32 %v832_v63, %v2516_v3  ;;  %v1887_v5 = vpop.f32.mrb[63].mxu0  ;;  %v2546_v2 = vpack.c.bf16 %v1024_v59, %v1017_v58  ;;  %v1030_v21 = vsub.f32 %v2540_v51, %v1029_v60  ;;  %v900_v42 = vpop.permute.xlu1 %899 }
 0x169   :  { %v2548_v7 = vpack.c.bf16 %v939_v61, %v936_v44  ;;  %v2550_v9 = vsub.f32 %v913_v56, %v939_v61  ;;  %v1006_v5 = vand.u32 4294901760, %v1005_v54 }
 0x16a   :  { %v942_v15 = vand.u32 4294901760, %v914_v1  ;;  %v907_v16 = vadd.f32 %v890_v62, %v833_v4  ;;  %v1031_v26 = vand.u32 4294901760, %v1030_v21 }
 0x16b   :  { %v1036_v28 = vand.u32 4294901760, %v2550_v9  ;;  %2016 = vmatpush3.bf16.msra.mxu1 %v2548_v7  ;;  %v838_v29 = vpop.f32.mrb[64].mxu0  ;;  %v2039_v3 = vpack.c.bf16 %v2550_v9, %v2540_v51 }
 0x16c   :  { %v2559_v30 = vsub.f32 %v914_v1, %v942_v15  ;;  %v915_v31 = vmax.f32 %v907_v16, 0.0  ;;  %v839_v10 = vadd.f32 %v838_v29, %v2518_v6  ;;  %v1890_v11 = vpop.f32.mrb[65].mxu0  ;;  %2017 = vmatprep.subr.bf16.mxu1 %v2135_v12 }
 0x16d   :  { %v1037_v17 = vsub.f32 %v2550_v9, %v1036_v28  ;;  %v2567_v19 = vpack.c.bf16 %v1036_v28, %v1029_v60 }
 0x16e   :  { %v1043_v20 = vand.u32 4294901760, %v2559_v30  ;;  %v945_v23 = vand.u32 4294901760, %v915_v31  ;;  %v908_v24 = vadd.f32 %v895_v14, %v839_v10  ;;  %v1495_v10 = vlaneseq }
 0x16f   :  { %v844_v25 = vpop.f32.mrb[66].mxu0  ;;  %v1038_v27 = vand.u32 4294901760, %v1037_v17 }
 0x170   :  { %v2570_v32 = vpack.c.bf16 %v945_v23, %v942_v15  ;;  %v1049_v6 = vsub.f32 %v915_v31, %v945_v23  ;;  %v916_v34 = vmax.f32 %v908_v24, 0.0  ;;  %v1893_v37 = vpop.f32.mrb[67].mxu0  ;;  %v845_v38 = vadd.f32 %v844_v25, %v2520_v8 }
 0x171   :  { %v2027_v40 = vpack.c.bf16 %v1038_v27, %v1031_v26  ;;  %v1044_v43 = vsub.f32 %v2559_v30, %v1043_v20 }
 0x172   :  { %v1050_v44 = vand.u32 4294901760, %v1049_v6  ;;  %v948_v47 = vand.u32 4294901760, %v916_v34  ;;  %2019 = vmatpush3.bf16.msra.mxu1 %v2570_v32  ;;  %v2042_v46 = vpack.c.bf16 %v1049_v6, %v2559_v30  ;;  %v909_v48 = vadd.f32 %v900_v42, %v845_v38 }
 0x173   :  { %v850_v49 = vpop.f32.mrb[18].mxu0  ;;  %2020 = vmatprep.subr.bf16.mxu1 %v2135_v12  ;;  %v1045_v58 = vand.u32 4294901760, %v1044_v43 }
 0x174   :  { %v1051_v52 = vsub.f32 %v1049_v6, %v1050_v44  ;;  %v1056_v53 = vsub.f32 %v916_v34, %v948_v47  ;;  %v2579_v8 = vadd.f32 %v850_v49, %v2514_v41  ;;  %v1896_v50 = vpop.f32.mrb[19].mxu0  ;;  %v2066_v56 = vpack.c.bf16 %v1050_v44, %v1043_v20 }
 0x175   :  { %v917_v57 = vmax.f32 %v909_v48, 0.0  ;;  %v2637_v20 = vshrl.u32 %v1495_v10, 7 }
 0x176   :  { %v1052_v59 = vand.u32 4294901760, %v1051_v52  ;;  %v1057_v60 = vand.u32 4294901760, %v1056_v53 }
 0x177   :  { %v951_v61 = vand.u32 4294901760, %v917_v57  ;;  %v1497_v25 = vsub.s32 0, %v2637_v20 }
 0x178   :  { %v2030_v63 = vpack.c.bf16 %v1052_v59, %v1045_v58  ;;  %v1058_v62 = vsub.f32 %v1056_v53, %v1057_v60  ;;  %v1527_v58 = vsub.s32 1, %v2637_v20 }
 0x179   :  { %v2021_v1 = vpack.c.bf16 %v951_v61, %v948_v47  ;;  %v1063_v4 = vsub.f32 %v917_v57, %v951_v61 }
 0x17a   :  { %v1059_v28 = vand.u32 4294901760, %v1058_v62 }
 0x17b   :  { %v1064_v15 = vand.u32 4294901760, %v1063_v4  ;;  %2022 = vmatpush3.bf16.msra.mxu1 %v2021_v1  ;;  %v2045_v41 = vpack.c.bf16 %v1063_v4, %v1056_v53 }
 0x17c   :  { %2023 = vmatprep.subr.bf16.mxu1 %v2135_v12 }
 0x17d   :  { %v1065_v16 = vsub.f32 %v1063_v4, %v1064_v15  ;;  %v2069_v21 = vpack.c.bf16 %v1064_v15, %v1057_v60 }
 0x17e   :  { %1914 = vmatmul.mubr.f32.vlgmr.msra.gmra.mrb[32].mxu1 %v1006_v5 }
 0x17f   :  { %2025 = vmatpush3.bf16.msra.mxu1 %v2546_v2  ;;  %v1066_v29 = vand.u32 4294901760, %v1065_v16  ;;  %1932 = vmatprep.mubr.msk.f32.mxu1 %vm2133_vm1, %v2132_v0 }
 0x180   :  { %2026 = vmatprep.subr.bf16.mxu1 %v2135_v12 }
 0x181   :  { %v2033_v30 = vpack.c.bf16 %v1066_v29, %v1059_v28 }
 0x183   :  { %2028 = vmatpush3.bf16.msra.mxu1 %v2027_v40 }
 0x184   :  { %2029 = vmatprep.subr.bf16.mxu1 %v2135_v12 }
 0x187   :  { %2031 = vmatpush3.bf16.msra.mxu1 %v2030_v63 }
 0x188   :  { %2032 = vmatprep.subr.bf16.mxu1 %v2135_v12 }
 0x18b   :  { %2034 = vmatpush3.bf16.msra.mxu1 %v2033_v30 }
 0x18c   :  { %2035 = vmatprep.subr.bf16.mxu1 %v2135_v12 }
 0x18e   :  { %1933 = vmatmul.mubr.f32.vlgmr.msra.gmra.mrb[32].mxu1 %v2552_v13 }
 0x18f   :  { %2037 = vmatpush3.bf16.msra.mxu1 %v2036_v45  ;;  %1951 = vmatprep.mubr.msk.f32.mxu1 %vm2133_vm1, %v2132_v0 }
 0x190   :  { %2038 = vmatprep.subr.bf16.mxu1 %v2135_v12 }
 0x193   :  { %2040 = vmatpush3.bf16.msra.mxu1 %v2039_v3 }
 0x194   :  { %2041 = vmatprep.subr.bf16.mxu1 %v2135_v12 }
 0x197   :  { %2043 = vmatpush3.bf16.msra.mxu1 %v2042_v46 }
 0x198   :  { %2044 = vmatprep.subr.bf16.mxu1 %v2135_v12 }
 0x19b   :  { %2046 = vmatpush3.bf16.msra.mxu1 %v2045_v41 }
 0x19c   :  { %2047 = vmatprep.subr.bf16.mxu1 %v2135_v12 }
 0x19e   :  { %1952 = vmatmul.mubr.f32.vlgmr.msra.gmra.mrb[32].mxu1 %v2565_v18  ;;  %v1483_v18 = vrot.slane %v2579_v8, 4 }
 0x19f   :  { %2049 = vmatpush3.bf16.msra.mxu1 %v2526_v35  ;;  %1970 = vmatprep.mubr.msk.f32.mxu1 %vm2133_vm1, %v2132_v0 }
 0x1a0   :  { %2050 = vmatprep.subr.bf16.mxu1 %v2135_v12 }
 0x1a3   :  { %2052 = vmatpush3.bf16.msra.mxu1 %v2548_v7 }
 0x1a4   :  { %2053 = vmatprep.subr.bf16.mxu1 %v2135_v12 }
 0x1a7   :  { %2055 = vmatpush3.bf16.msra.mxu1 %v2570_v32 }
 0x1a8   :  { %2056 = vmatprep.subr.bf16.mxu1 %v2135_v12 }
 0x1ab   :  { %2058 = vmatpush3.bf16.msra.mxu1 %v2021_v1 }
 0x1ac   :  { %2059 = vmatprep.subr.bf16.mxu1 %v2135_v12 }
 0x1ae   :  { %1971 = vmatmul.mubr.f32.vlgmr.msra.gmra.mrb[32].mxu1 %v1004_v39 }
 0x1af   :  { %2061 = vmatpush3.bf16.msra.mxu1 %v2542_v55  ;;  %1989 = vmatprep.mubr.msk.f32.mxu1 %vm2133_vm1, %v2132_v0 }
 0x1b0   :  { %2062 = vmatprep.subr.bf16.mxu1 %v2135_v12 }
 0x1b3   :  { %2064 = vmatpush3.bf16.msra.mxu1 %v2567_v19 }
 0x1b4   :  { %2065 = vmatprep.subr.bf16.mxu1 %v2135_v12 }
 0x1b7   :  { %2067 = vmatpush3.bf16.msra.mxu1 %v2066_v56 }
 0x1b8   :  { %2068 = vmatprep.subr.bf16.mxu1 %v2135_v12 }
 0x1bb   :  { %2070 = vmatpush3.bf16.msra.mxu1 %v2069_v21 }
 0x1bc   :  { %2071 = vmatprep.subr.bf16.mxu1 %v2135_v12 }
 0x1be   :  { %1990 = vmatmul.mubr.f32.vlgmr.msra.gmra.mrb[32].mxu1 %v2552_v13 }
 0x1bf   :  { %2073 = vmatpush3.bf16.msra.mxu1 %v2526_v35  ;;  %2008 = vmatprep.mubr.msk.f32.mxu1 %vm2133_vm1, %v2132_v0  ;;  %v923_v35 = vpop.permute.xlu0 %922 }
 0x1c0   :  { %2074 = vmatprep.subr.bf16.mxu1 %v2135_v12 }
 0x1c3   :  { %2076 = vmatpush3.bf16.msra.mxu1 %v2548_v7  ;;  %v1523_v63 = vpop.permute.xlu0 %1522 }
 0x1c4   :  { %2077 = vmatprep.subr.bf16.mxu1 %v2135_v12 }
 0x1c7   :  { %2079 = vmatpush3.bf16.msra.mxu1 %v2570_v32  ;;  %v1493_v32 = vpop.permute.xlu1 %1492 }
 0x1c8   :  { %2080 = vmatprep.subr.bf16.mxu1 %v2135_v12 }
 0x1cb   :  { %2082 = vmatpush3.bf16.msra.mxu1 %v2021_v1 }
 0x1ce   :  { %2009 = vmatmul.mubr.f32.vlgmr.msra.gmra.mrb[32].mxu1 %v2552_v13 }
 0x2a1   :  { %v1462_v0 = vpop.f32.mrb[32].mxu1 }
 0x2a2   :  { %v2086_v36 = vadd.f32 %v1462_v0, %v923_v35  ;;  %v2010_v45 = vpop.f32.mrb[33].mxu1 }
 0x2a4   :  { %v1468_v51 = vand.u32 2147483647, %v2086_v36  ;;  %v1467_v17 = vmax.f32 %v2086_v36, 0.0 }
 0x2a6   :  { %v1469_v55 = vsub.f32 0.0, %v1468_v51 }
 0x2a8   :  { %v1470_v2 = vmul.f32 1.442695, %v1469_v55 }
 0x2aa   :  { %2116 = vpow2.f32 %v1470_v2 }
 0x2b4   :  { %v2117_v7 = vpop.eup %2116 }
 0x2b5   :  { %v1472_v9 = vadd.f32 1.0, %v2117_v7  ;;  %v1475_v12 = vmul.f32 -0.5, %v2117_v7  ;;  %v1478_v31 = vand.u32 2147483647, %v2117_v7 }
 0x2b7   :  { %2118 = vlog2.f32 %v1472_v9  ;;  %v1476_v3 = vadd.f32 1.0, %v1475_v12  ;;  %vm1479_vm3 = vcmp.lt.f32.partialorder %v1478_v31, 0.0004427343  ;;  %v1553_v31 = vpop.permute.xlu1 %1552 }
 0x2b9   :  { %v1477_v14 = vmul.f32 %v2117_v7, %v1476_v3  ;;  %v1557_v7 = vsub.s32 2, %v2637_v20 }
 0x2c1   :  { %v2119_v13 = vpop.eup %2118 }
 0x2c2   :  { %v1474_v11 = vmul.f32 0.6931472, %v2119_v13 }
 0x2c4   :  { %v1480_v33 = vsel %vm1479_vm3, %v1477_v14, %v1474_v11 }
 0x2c5   :  { %v1481_v19 = vadd.f32 %v1480_v33, %v1467_v17 }
 0x2c7   :  { %v1485_v23 = vmul.f32 %v1483_v18, %v1481_v19  ;;  %v1577_v56 = vrot.slane %v1481_v19, 4 }
 0x2c9   :  { %v1487_v24 = vrot.slane %v1485_v23, 4 }
 0x2cb   :  { %v1489_v26 = vadd.f32 %v2086_v36, %v1487_v24 }
 0x2cd   :  { %v1498_v27 = vrot.slane %v1489_v26, %v1497_v25 }
 0x2cf   :  { %v1499_v6 = vmul.f32 %v1498_v27, %v1493_v32 }
 0x2d1   :  { %v1500_v34 = vadd.f32 %v2086_v36, %v1499_v6 }
 0x2d3   :  { %v1502_v37 = vand.u32 2147483647, %v1500_v34  ;;  %v1501_v52 = vmax.f32 %v1500_v34, 0.0 }
 0x2d5   :  { %v1503_v38 = vsub.f32 0.0, %v1502_v37 }
 0x2d7   :  { %v1504_v39 = vmul.f32 1.442695, %v1503_v38 }
 0x2d9   :  { %2120 = vpow2.f32 %v1504_v39 }
 0x2e3   :  { %v2121_v40 = vpop.eup %2120 }
 0x2e4   :  { %v1506_v42 = vadd.f32 1.0, %v2121_v40  ;;  %v1509_v43 = vmul.f32 -0.5, %v2121_v40  ;;  %v1512_v47 = vand.u32 2147483647, %v2121_v40 }
 0x2e6   :  { %2122 = vlog2.f32 %v1506_v42  ;;  %v1510_v44 = vadd.f32 1.0, %v1509_v43  ;;  %vm1513_vm4 = vcmp.lt.f32.partialorder %v1512_v47, 0.0004427343 }
 0x2e8   :  { %v1511_v49 = vmul.f32 %v2121_v40, %v1510_v44 }
 0x2f0   :  { %v2123_v46 = vpop.eup %2122 }
 0x2f1   :  { %v1508_v48 = vmul.f32 0.6931472, %v2123_v46 }
 0x2f3   :  { %v1514_v53 = vsel %vm1513_vm4, %v1511_v49, %v1508_v48 }
 0x2f4   :  { %v1515_v50 = vadd.f32 %v1514_v53, %v1501_v52 }
 0x2f6   :  { %v1516_v57 = vmul.f32 %v1515_v50, %v1483_v18  ;;  %v1580_v54 = vrot.slane %v1515_v50, 4 }
 0x2f8   :  { %v1518_v59 = vrot.slane %v1516_v57, 4  ;;  %v1589_v60 = vsel %vm1588_vm5, %v1577_v56, %v1580_v54 }
 0x2fa   :  { %v1520_v61 = vadd.f32 %v1518_v59, %v1500_v34 }
 0x2fc   :  { %v1528_v1 = vrot.slane %v1520_v61, %v1527_v58 }
 0x2fe   :  { %v1529_v4 = vmul.f32 %v1528_v1, %v1523_v63 }
 0x300   :  { %v1530_v5 = vadd.f32 %v1529_v4, %v1500_v34 }
 0x302   :  { %v1532_v62 = vand.u32 2147483647, %v1530_v5  ;;  %v1531_v36 = vmax.f32 %v1530_v5, 0.0 }
 0x304   :  { %v1533_v15 = vsub.f32 0.0, %v1532_v62 }
 0x306   :  { %v1534_v41 = vmul.f32 1.442695, %v1533_v15 }
 0x308   :  { %2124 = vpow2.f32 %v1534_v41 }
 0x312   :  { %v2125_v16 = vpop.eup %2124 }
 0x313   :  { %v1536_v21 = vadd.f32 1.0, %v2125_v16  ;;  %v1539_v28 = vmul.f32 -0.5, %v2125_v16  ;;  %v1542_v30 = vand.u32 2147483647, %v2125_v16 }
 0x315   :  { %2126 = vlog2.f32 %v1536_v21  ;;  %v1540_v29 = vadd.f32 1.0, %v1539_v28  ;;  %vm1543_vm6 = vcmp.lt.f32.partialorder %v1542_v30, 0.0004427343 }
 0x317   :  { %v1541_v0 = vmul.f32 %v2125_v16, %v1540_v29 }
 0x31f   :  { %v2127_v22 = vpop.eup %2126 }
 0x320   :  { %v1538_v35 = vmul.f32 0.6931472, %v2127_v22 }
 0x322   :  { %v1544_v45 = vsel %vm1543_vm6, %v1541_v0, %v1538_v35 }
 0x323   :  { %v1545_v51 = vadd.f32 %v1544_v45, %v1531_v36 }
 0x325   :  { %v1546_v55 = vmul.f32 %v1545_v51, %v1483_v18  ;;  %v1583_v2 = vrot.slane %v1545_v51, 4 }
 0x327   :  { %v1548_v9 = vrot.slane %v1546_v55, 4  ;;  %v1591_v12 = vsel %vm1590_vm7, %v1589_v60, %v1583_v2 }
 0x329   :  { %v1550_v3 = vadd.f32 %v1548_v9, %v1530_v5 }
 0x32b   :  { %v1558_v13 = vrot.slane %v1550_v3, %v1557_v7 }
 0x32d   :  { %v1559_v10 = vmul.f32 %v1558_v13, %v1553_v31 }
 0x32f   :  { %v1560_v11 = vadd.f32 %v1559_v10, %v1530_v5 }
 0x331   :  { %v1562_v14 = vand.u32 2147483647, %v1560_v11  ;;  %v1561_v32 = vmax.f32 %v1560_v11, 0.0 }
 0x333   :  { %v1563_v17 = vsub.f32 0.0, %v1562_v14 }
 0x335   :  { %v1564_v33 = vmul.f32 1.442695, %v1563_v17 }
 0x337   :  { %2128 = vpow2.f32 %v1564_v33 }
 0x341   :  { %v2129_v19 = vpop.eup %2128 }
 0x342   :  { %v1566_v23 = vadd.f32 1.0, %v2129_v19  ;;  %v1569_v24 = vmul.f32 -0.5, %v2129_v19  ;;  %v1572_v18 = vand.u32 2147483647, %v2129_v19 }
 0x344   :  { %2130 = vlog2.f32 %v1566_v23  ;;  %v1570_v25 = vadd.f32 1.0, %v1569_v24  ;;  %vm1573_vm8 = vcmp.lt.f32.partialorder %v1572_v18, 0.0004427343 }
 0x346   :  { %v1571_v20 = vmul.f32 %v2129_v19, %v1570_v25 }
 0x34e   :  { %v2131_v26 = vpop.eup %2130 }
 0x34f   :  { %v1568_v27 = vmul.f32 0.6931472, %v2131_v26 }
 0x351   :  { %v1574_v6 = vsel %vm1573_vm8, %v1571_v20, %v1568_v27 }
 0x352   :  { %v1575_v34 = vadd.f32 %v1574_v6, %v1561_v32 }
 0x354   :  { %v1586_v37 = vrot.slane %v1575_v34, 4 }
 0x356   :  { %v1593_v38 = vsel %vm1592_vm9, %v1591_v12, %v1586_v37 }
 0x357   :  { %v1594_v39 = vmul.f32 %v2579_v8, %v1593_v38  ;;  %v1597_v40 = vrot.slane %v1593_v38, 4 }
 0x359   :  { %v1595_v42 = vadd.f32 %v1594_v39, %v1560_v11  ;;  %v1600_v43 = vsel %vm1599_vm10, %v1560_v11, %v1597_v40 }
 0x35a   :  { %1602 = vst.msk [vmem:[%s2655_s6] sm:$0xff] %vm1601_vm11, %v1600_v43 }
 0x35b   :  { %1604 = vst.msk [vmem:[%s2655_s6 + $0x8] sm:$0xf] %vm1603_vm12, %v1595_v42 }

</bundles_post_ra>
